<compile_context>
chip_gen: v7x
topology: tpu7x:2x2x1
jax: 0.10.0
libtpu: 0.0.40
codegen_flags: <defaults>
</compile_context>

<pallas_src>
import functools

import jax
import jax.numpy as jnp
from jax.experimental import pallas as pl
from jax.experimental.pallas import tpu as pltpu


def _round_up(x, m):
    return (x + m - 1) // m * m


def _lstm_decoder_kernel(x_ref, w_ih_ref, w_hh_ref, b_gate_ref,
                         w_out_ref, b_out_ref, out_ref, gx_ref, hs_ref, *,
                         seq_len, batch, hidden):
    """Whole-sequence LSTM decode in a single kernel invocation.

    x_ref:      (T*B, E)   time-major flattened inputs
    w_ih_ref:   (E, 4H)    W_ih^T  (PyTorch gate order i, f, g, o; g cols pre-scaled x2)
    w_hh_ref:   (H, 4H)    W_hh^T  (g cols pre-scaled x2)
    b_gate_ref: (1, 4H)    b_ih + b_hh (g cols pre-scaled x2)
    w_out_ref:  (H, Vp)    hidden2vocab weight^T, zero-padded to Vp (mult. of 128)
    b_out_ref:  (1, Vp)
    out_ref:    (B*T, Vp)  batch-major logits rows (row b*T + t), lane-dense
    gx_ref:     (T*B, 4H)  VMEM scratch: precomputed input-projection gates
    hs_ref:     (B*T, H)   VMEM scratch: per-step hidden states, batch-major
    """
    T, B, H = seq_len, batch, hidden

    # ---- hoisted input projection: one batched MXU matmul for all timesteps ----
    # Materialized into explicit VMEM scratch so it never sits in vregs across the
    # serial recurrence (deliberate "spill" off the critical path).
    gx_ref[...] = (jnp.dot(x_ref[...], w_ih_ref[...],
                           preferred_element_type=jnp.float32)
                   + b_gate_ref[...])                               # (T*B, 4H)

    w_hh = w_hh_ref[...]

    def step(t, carry):
        h, c = carry
        row = pl.multiple_of(t * B, B)
        gates = gx_ref[pl.ds(row, B), :] + jnp.dot(
            h, w_hh, preferred_element_type=jnp.float32)            # (B, 4H)
        # Single EUP pass: g-gate pre-activations were pre-scaled x2 in the
        # wrapper, so tanh(z) = 2*sigmoid(2z) - 1 falls out of the same sigmoid.
        act = jax.nn.sigmoid(gates)
        i_g = act[:, 0 * H:1 * H]
        f_g = act[:, 1 * H:2 * H]
        g_g = 2.0 * act[:, 2 * H:3 * H] - 1.0                       # = tanh(z_g)
        o_g = act[:, 3 * H:4 * H]
        c = f_g * c + i_g * g_g
        h = o_g * jnp.tanh(c)
        # Batch-major hidden rows (b*T + t): the single post-loop projection then
        # lands directly in (B, T, Vp) order. Reordering these H-wide rows is far
        # cheaper than reordering/re-storing Vp-wide logits later.
        for b in range(B):
            hs_ref[pl.ds(b * T + t, 1), :] = h[b:b + 1, :]
        return h, c

    h0 = jnp.zeros((B, H), jnp.float32)
    c0 = jnp.zeros((B, H), jnp.float32)
    jax.lax.fori_loop(0, T, step, (h0, c0), unroll=True)

    # ---- hoisted output projection: ONE matmul + ONE dense store ----
    logits = (jnp.dot(hs_ref[...], w_out_ref[...],
                      preferred_element_type=jnp.float32)
              + b_out_ref[...])                                     # (B*T, Vp)
    out_ref[...] = logits.astype(out_ref.dtype)


def lstm_decode_pallas(inputs_bte, w_ih, w_hh, b_ih, b_hh, w_out, b_out):
    """inputs_bte: (B, T, E) float32. Returns logits (B, T, V) float32."""
    B, T, E = inputs_bte.shape
    H = w_ih.shape[0] // 4
    V = w_out.shape[0]
    Vp = _round_up(V, 128)

    # Pre-transposed / padded parameters. The x2 tanh-via-sigmoid scale is folded
    # into the g-gate columns (i, f, g, o packing -> columns [2H:3H]).
    gate_scale = jnp.ones((1, 4 * H), jnp.float32).at[:, 2 * H:3 * H].set(2.0)
    w_ih_t = jnp.asarray(w_ih.T, jnp.float32) * gate_scale              # (E, 4H)
    w_hh_t = jnp.asarray(w_hh.T, jnp.float32) * gate_scale              # (H, 4H)
    b_gate = jnp.asarray((b_ih + b_hh)[None, :], jnp.float32) * gate_scale
    w_out_t = jnp.zeros((H, Vp), jnp.float32).at[:, :V].set(w_out.T)    # (H, Vp)
    b_out_p = jnp.zeros((1, Vp), jnp.float32).at[:, :V].set(b_out)      # (1, Vp)
    # TODO(synk): at production H/V cast w_ih_t/w_hh_t/w_out_t (and the h operand
    # of the recurrent dot) to bf16 with f32 accumulation/cell state, and tile the
    # vocab axis of the output projection over a 'parallel' grid so it fits v7x's
    # 64 MiB VMEM and uses both of its TensorCores.

    # Time-major, flattened so the in-kernel input projection is a single matmul.
    x2d = jnp.transpose(inputs_bte, (1, 0, 2)).reshape(T * B, E)

    kernel = functools.partial(_lstm_decoder_kernel,
                               seq_len=T, batch=B, hidden=H)

    io_elems = (T * B * E + E * 4 * H + H * 4 * H + 4 * H
                + H * Vp + Vp + B * T * Vp)
    scratch_elems = T * B * 4 * H + B * T * H
    resident_bytes = 4 * (io_elems + scratch_elems)
    cost = pl.CostEstimate(
        flops=2 * T * B * (E * 4 * H + H * 4 * H + H * Vp),
        transcendentals=T * B * 5 * H,       # sigmoid over 4H + tanh over H per step
        bytes_accessed=4 * io_elems)

    logits2d = pl.pallas_call(
        kernel,
        out_shape=jax.ShapeDtypeStruct((B * T, Vp), jnp.float32),
        in_specs=[pl.BlockSpec(memory_space=pltpu.MemorySpace.VMEM)
                  for _ in range(6)],
        out_specs=pl.BlockSpec(memory_space=pltpu.MemorySpace.VMEM),
        scratch_shapes=[pltpu.VMEM((T * B, 4 * H), jnp.float32),    # gx
                        pltpu.VMEM((B * T, H), jnp.float32)],       # hs
        compiler_params=pltpu.CompilerParams(
            vmem_limit_bytes=max(2 * resident_bytes + (1 << 20), 8 << 20)),
        cost_estimate=cost,
    )(x2d, w_ih_t, w_hh_t, b_gate, w_out_t, b_out_p)

    # (B*T, Vp) batch-major rows -> (B, T, V): metadata reshape + cheap slice.
    return logits2d.reshape(B, T, Vp)[:, :, :V]


class DecoderRNNPallas:
    """JAX/Pallas port of the PyTorch DecoderRNN forward pass (num_layers=1)."""

    def __init__(self, embed_size, hidden_size, vocab_size, key):
        self.embed_size = embed_size
        self.hidden_size = hidden_size
        self.vocab_size = vocab_size

        ks = jax.random.split(key, 7)
        E, H, V = embed_size, hidden_size, vocab_size
        s = 1.0 / jnp.sqrt(jnp.float32(H))
        # Deterministic synthetic parameters (shapes match nn.Embedding/LSTM/Linear).
        self.emb = jax.random.normal(ks[0], (V, E), jnp.float32)
        self.w_ih = jax.random.uniform(ks[1], (4 * H, E), jnp.float32, -s, s)
        self.w_hh = jax.random.uniform(ks[2], (4 * H, H), jnp.float32, -s, s)
        self.b_ih = jax.random.uniform(ks[3], (4 * H,), jnp.float32, -s, s)
        self.b_hh = jax.random.uniform(ks[4], (4 * H,), jnp.float32, -s, s)
        self.w_out = jax.random.uniform(ks[5], (V, H), jnp.float32, -s, s)
        self.b_out = jax.random.uniform(ks[6], (V,), jnp.float32, -s, s)

    def forward(self, features, captions):
        """features: (B, E) float32; captions: (B, L) int32. Returns (B, L, V)."""
        embeds = jnp.take(self.emb, captions[:, :-1], axis=0)          # (B, L-1, E)
        inputs = jnp.concatenate([features[:, None, :], embeds], 1)    # (B, L, E)
        return lstm_decode_pallas(inputs, self.w_ih, self.w_hh, self.b_ih,
                                  self.b_hh, self.w_out, self.b_out)   # (B, L, V)


def _reference_forward(model, features, captions):
    """Pure-JAX reference of the same semantics, for a sanity check."""
    H = model.hidden_size
    embeds = jnp.take(model.emb, captions[:, :-1], axis=0)
    inputs = jnp.concatenate([features[:, None, :], embeds], 1)  # (B, T, E)
    B, T, _ = inputs.shape
    h = jnp.zeros((B, H), jnp.float32)
    c = jnp.zeros((B, H), jnp.float32)
    b = model.b_ih + model.b_hh

    def step(carry, x_t):
        h, c = carry
        g = x_t @ model.w_ih.T + h @ model.w_hh.T + b
        i = jax.nn.sigmoid(g[:, 0 * H:1 * H])
        f = jax.nn.sigmoid(g[:, 1 * H:2 * H])
        gg = jnp.tanh(g[:, 2 * H:3 * H])
        o = jax.nn.sigmoid(g[:, 3 * H:4 * H])
        c = f * c + i * gg
        h = o * jnp.tanh(c)
        return (h, c), h @ model.w_out.T + model.b_out

    (_, _), outs = jax.lax.scan(step, (h, c), jnp.transpose(inputs, (1, 0, 2)))
    return jnp.transpose(outs, (1, 0, 2))


if __name__ == "__main__":
    key = jax.random.PRNGKey(0)
    k_param, k_feat, k_cap = jax.random.split(key, 3)

    batch, seq_len = 2, 8            # captions length L=8 -> T = 1 + (L-1) = 8
    embed_size, hidden_size, vocab_size = 32, 32, 64

    model = DecoderRNNPallas(embed_size, hidden_size, vocab_size, k_param)

    features = jax.random.normal(k_feat, (batch, embed_size), jnp.float32)
    captions = jax.random.randint(k_cap, (batch, seq_len), 0, vocab_size, jnp.int32)

    out = model.forward(features, captions)
    out = jax.block_until_ready(out)

    ref = jax.block_until_ready(_reference_forward(model, features, captions))
    assert out.shape == (batch, seq_len, vocab_size)
    assert jnp.allclose(out, ref, atol=1e-4, rtol=1e-4)

    print("KERNEL_OK")
</pallas_src>

<mosaic_0001>
module attributes {stable_mosaic.version = 11 : i64} {
  func.func @_lstm_decoder_kernel(%arg0: memref<16x32xf32, #tpu.memory_space<vmem>>, %arg1: memref<32x128xf32, #tpu.memory_space<vmem>>, %arg2: memref<32x128xf32, #tpu.memory_space<vmem>>, %arg3: memref<1x128xf32, #tpu.memory_space<vmem>>, %arg4: memref<32x128xf32, #tpu.memory_space<vmem>>, %arg5: memref<1x128xf32, #tpu.memory_space<vmem>>, %arg6: memref<16x128xf32, #tpu.memory_space<vmem>>, %arg7: memref<16x128xf32, #tpu.memory_space<vmem>>, %arg8: memref<16x32xf32, #tpu.memory_space<vmem>>) attributes {dimension_semantics = [], scalar_prefetch = 0 : i64, scratch_operands = 2 : i64, tpu.core_type = #tpu.core_type<tc>} {
    %c0 = arith.constant 0 : index
    %c0_0 = arith.constant 0 : index
    %0 = vector.load %arg0[%c0, %c0_0] : memref<16x32xf32, #tpu.memory_space<vmem>>, vector<16x32xf32>
    %c0_1 = arith.constant 0 : index
    %c0_2 = arith.constant 0 : index
    %1 = vector.load %arg1[%c0_1, %c0_2] : memref<32x128xf32, #tpu.memory_space<vmem>>, vector<32x128xf32>
    %cst = arith.constant dense<0.000000e+00> : vector<16x128xf32>
    %2 = tpu.matmul %0, %1, %cst {dimension_numbers = #tpu.dot_dimension_numbers<[1], [0], [0], [1], [0, 0, 1, 1], [], []>} : vector<16x32xf32>, vector<32x128xf32>, vector<16x128xf32> -> vector<16x128xf32>
    %c0_3 = arith.constant 0 : index
    %c0_4 = arith.constant 0 : index
    %3 = vector.load %arg3[%c0_3, %c0_4] : memref<1x128xf32, #tpu.memory_space<vmem>>, vector<1x128xf32>
    %4 = vector.broadcast %3 : vector<1x128xf32> to vector<16x128xf32>
    %5 = arith.addf %2, %4 : vector<16x128xf32>
    %c0_5 = arith.constant 0 : index
    %c0_6 = arith.constant 0 : index
    %6 = vector.load %arg7[%c0_5, %c0_6] : memref<16x128xf32, #tpu.memory_space<vmem>>, vector<16x128xf32>
    tpu.vector_store %arg7[%c0_5, %c0_6], %5 {strides = array<i32>} : memref<16x128xf32, #tpu.memory_space<vmem>>, vector<16x128xf32>,
    %c0_7 = arith.constant 0 : index
    %c0_8 = arith.constant 0 : index
    %7 = vector.load %arg2[%c0_7, %c0_8] : memref<32x128xf32, #tpu.memory_space<vmem>>, vector<32x128xf32>
    %cst_9 = arith.constant 0.000000e+00 : f32
    %8 = vector.broadcast %cst_9 : f32 to vector<2x32xf32>
    %cst_10 = arith.constant 0.000000e+00 : f32
    %9 = vector.broadcast %cst_10 : f32 to vector<2x32xf32>
    %c0_i32 = arith.constant 0 : i32
    %c2_i32 = arith.constant 2 : i32
    %10 = arith.muli %c0_i32, %c2_i32 : i32
    %11 = tpu.assume_multiple %10, 2 : i32
    %12 = arith.index_cast %11 : i32 to index
    %c0_11 = arith.constant 0 : index
    %13 = vector.load %arg7[%12, %c0_11] : memref<16x128xf32, #tpu.memory_space<vmem>>, vector<2x128xf32>
    %cst_12 = arith.constant dense<0.000000e+00> : vector<2x128xf32>
    %14 = tpu.matmul %8, %7, %cst_12 {dimension_numbers = #tpu.dot_dimension_numbers<[1], [0], [0], [1], [0, 0, 1, 1], [], []>} : vector<2x32xf32>, vector<32x128xf32>, vector<2x128xf32> -> vector<2x128xf32>
    %15 = arith.addf %13, %14 : vector<2x128xf32>
    %16 = arith.negf %15 : vector<2x128xf32>
    %17 = math.exp %16 : vector<2x128xf32>
    %cst_13 = arith.constant 1.000000e+00 : f32
    %18 = vector.broadcast %cst_13 : f32 to vector<2x128xf32>
    %19 = arith.addf %18, %17 : vector<2x128xf32>
    %20 = arith.divf %18, %19 : vector<2x128xf32>
    %21 = vector.extract_strided_slice %20 {offsets = [0, 0], sizes = [2, 32], strides = [1, 1]} : vector<2x128xf32> to vector<2x32xf32>
    %22 = vector.extract_strided_slice %20 {offsets = [0, 32], sizes = [2, 32], strides = [1, 1]} : vector<2x128xf32> to vector<2x32xf32>
    %23 = vector.extract_strided_slice %20 {offsets = [0, 64], sizes = [2, 32], strides = [1, 1]} : vector<2x128xf32> to vector<2x32xf32>
    %cst_14 = arith.constant 2.000000e+00 : f32
    %24 = vector.broadcast %cst_14 : f32 to vector<2x32xf32>
    %25 = arith.mulf %24, %23 : vector<2x32xf32>
    %cst_15 = arith.constant 1.000000e+00 : f32
    %26 = vector.broadcast %cst_15 : f32 to vector<2x32xf32>
    %27 = arith.subf %25, %26 : vector<2x32xf32>
    %28 = vector.extract_strided_slice %20 {offsets = [0, 96], sizes = [2, 32], strides = [1, 1]} : vector<2x128xf32> to vector<2x32xf32>
    %29 = arith.mulf %22, %9 : vector<2x32xf32>
    %30 = arith.mulf %21, %27 : vector<2x32xf32>
    %31 = arith.addf %29, %30 : vector<2x32xf32>
    %32 = math.tanh %31 : vector<2x32xf32>
    %33 = arith.mulf %28, %32 : vector<2x32xf32>
    %34 = vector.extract_strided_slice %33 {offsets = [0, 0], sizes = [1, 32], strides = [1, 1]} : vector<2x32xf32> to vector<1x32xf32>
    %c0_i32_16 = arith.constant 0 : i32
    %35 = arith.addi %c0_i32_16, %c0_i32 : i32
    %36 = arith.index_cast %35 : i32 to index
    %c0_17 = arith.constant 0 : index
    %37 = vector.load %arg8[%36, %c0_17] : memref<16x32xf32, #tpu.memory_space<vmem>>, vector<1x32xf32>
    tpu.vector_store %arg8[%36, %c0_17], %34 {strides = array<i32>} : memref<16x32xf32, #tpu.memory_space<vmem>>, vector<1x32xf32>,
    %38 = vector.extract_strided_slice %33 {offsets = [1, 0], sizes = [1, 32], strides = [1, 1]} : vector<2x32xf32> to vector<1x32xf32>
    %c8_i32 = arith.constant 8 : i32
    %39 = arith.addi %c8_i32, %c0_i32 : i32
    %40 = arith.index_cast %39 : i32 to index
    %c0_18 = arith.constant 0 : index
    %41 = vector.load %arg8[%40, %c0_18] : memref<16x32xf32, #tpu.memory_space<vmem>>, vector<1x32xf32>
    tpu.vector_store %arg8[%40, %c0_18], %38 {strides = array<i32>} : memref<16x32xf32, #tpu.memory_space<vmem>>, vector<1x32xf32>,
    %c1_i32 = arith.constant 1 : i32
    %c2_i32_19 = arith.constant 2 : i32
    %42 = arith.muli %c1_i32, %c2_i32_19 : i32
    %43 = tpu.assume_multiple %42, 2 : i32
    %44 = arith.index_cast %43 : i32 to index
    %c0_20 = arith.constant 0 : index
    %45 = vector.load %arg7[%44, %c0_20] : memref<16x128xf32, #tpu.memory_space<vmem>>, vector<2x128xf32>
    %cst_21 = arith.constant dense<0.000000e+00> : vector<2x128xf32>
    %46 = tpu.matmul %33, %7, %cst_21 {dimension_numbers = #tpu.dot_dimension_numbers<[1], [0], [0], [1], [0, 0, 1, 1], [], []>} : vector<2x32xf32>, vector<32x128xf32>, vector<2x128xf32> -> vector<2x128xf32>
    %47 = arith.addf %45, %46 : vector<2x128xf32>
    %48 = arith.negf %47 : vector<2x128xf32>
    %49 = math.exp %48 : vector<2x128xf32>
    %cst_22 = arith.constant 1.000000e+00 : f32
    %50 = vector.broadcast %cst_22 : f32 to vector<2x128xf32>
    %51 = arith.addf %50, %49 : vector<2x128xf32>
    %52 = arith.divf %50, %51 : vector<2x128xf32>
    %53 = vector.extract_strided_slice %52 {offsets = [0, 0], sizes = [2, 32], strides = [1, 1]} : vector<2x128xf32> to vector<2x32xf32>
    %54 = vector.extract_strided_slice %52 {offsets = [0, 32], sizes = [2, 32], strides = [1, 1]} : vector<2x128xf32> to vector<2x32xf32>
    %55 = vector.extract_strided_slice %52 {offsets = [0, 64], sizes = [2, 32], strides = [1, 1]} : vector<2x128xf32> to vector<2x32xf32>
    %cst_23 = arith.constant 2.000000e+00 : f32
    %56 = vector.broadcast %cst_23 : f32 to vector<2x32xf32>
    %57 = arith.mulf %56, %55 : vector<2x32xf32>
    %cst_24 = arith.constant 1.000000e+00 : f32
    %58 = vector.broadcast %cst_24 : f32 to vector<2x32xf32>
    %59 = arith.subf %57, %58 : vector<2x32xf32>
    %60 = vector.extract_strided_slice %52 {offsets = [0, 96], sizes = [2, 32], strides = [1, 1]} : vector<2x128xf32> to vector<2x32xf32>
    %61 = arith.mulf %54, %31 : vector<2x32xf32>
    %62 = arith.mulf %53, %59 : vector<2x32xf32>
    %63 = arith.addf %61, %62 : vector<2x32xf32>
    %64 = math.tanh %63 : vector<2x32xf32>
    %65 = arith.mulf %60, %64 : vector<2x32xf32>
    %66 = vector.extract_strided_slice %65 {offsets = [0, 0], sizes = [1, 32], strides = [1, 1]} : vector<2x32xf32> to vector<1x32xf32>
    %c0_i32_25 = arith.constant 0 : i32
    %67 = arith.addi %c0_i32_25, %c1_i32 : i32
    %68 = arith.index_cast %67 : i32 to index
    %c0_26 = arith.constant 0 : index
    %69 = vector.load %arg8[%68, %c0_26] : memref<16x32xf32, #tpu.memory_space<vmem>>, vector<1x32xf32>
    tpu.vector_store %arg8[%68, %c0_26], %66 {strides = array<i32>} : memref<16x32xf32, #tpu.memory_space<vmem>>, vector<1x32xf32>,
    %70 = vector.extract_strided_slice %65 {offsets = [1, 0], sizes = [1, 32], strides = [1, 1]} : vector<2x32xf32> to vector<1x32xf32>
    %c8_i32_27 = arith.constant 8 : i32
    %71 = arith.addi %c8_i32_27, %c1_i32 : i32
    %72 = arith.index_cast %71 : i32 to index
    %c0_28 = arith.constant 0 : index
    %73 = vector.load %arg8[%72, %c0_28] : memref<16x32xf32, #tpu.memory_space<vmem>>, vector<1x32xf32>
    tpu.vector_store %arg8[%72, %c0_28], %70 {strides = array<i32>} : memref<16x32xf32, #tpu.memory_space<vmem>>, vector<1x32xf32>,
    %c2_i32_29 = arith.constant 2 : i32
    %c2_i32_30 = arith.constant 2 : i32
    %74 = arith.muli %c2_i32_29, %c2_i32_30 : i32
    %75 = tpu.assume_multiple %74, 2 : i32
    %76 = arith.index_cast %75 : i32 to index
    %c0_31 = arith.constant 0 : index
    %77 = vector.load %arg7[%76, %c0_31] : memref<16x128xf32, #tpu.memory_space<vmem>>, vector<2x128xf32>
    %cst_32 = arith.constant dense<0.000000e+00> : vector<2x128xf32>
    %78 = tpu.matmul %65, %7, %cst_32 {dimension_numbers = #tpu.dot_dimension_numbers<[1], [0], [0], [1], [0, 0, 1, 1], [], []>} : vector<2x32xf32>, vector<32x128xf32>, vector<2x128xf32> -> vector<2x128xf32>
    %79 = arith.addf %77, %78 : vector<2x128xf32>
    %80 = arith.negf %79 : vector<2x128xf32>
    %81 = math.exp %80 : vector<2x128xf32>
    %cst_33 = arith.constant 1.000000e+00 : f32
    %82 = vector.broadcast %cst_33 : f32 to vector<2x128xf32>
    %83 = arith.addf %82, %81 : vector<2x128xf32>
    %84 = arith.divf %82, %83 : vector<2x128xf32>
    %85 = vector.extract_strided_slice %84 {offsets = [0, 0], sizes = [2, 32], strides = [1, 1]} : vector<2x128xf32> to vector<2x32xf32>
    %86 = vector.extract_strided_slice %84 {offsets = [0, 32], sizes = [2, 32], strides = [1, 1]} : vector<2x128xf32> to vector<2x32xf32>
    %87 = vector.extract_strided_slice %84 {offsets = [0, 64], sizes = [2, 32], strides = [1, 1]} : vector<2x128xf32> to vector<2x32xf32>
    %cst_34 = arith.constant 2.000000e+00 : f32
    %88 = vector.broadcast %cst_34 : f32 to vector<2x32xf32>
    %89 = arith.mulf %88, %87 : vector<2x32xf32>
    %cst_35 = arith.constant 1.000000e+00 : f32
    %90 = vector.broadcast %cst_35 : f32 to vector<2x32xf32>
    %91 = arith.subf %89, %90 : vector<2x32xf32>
    %92 = vector.extract_strided_slice %84 {offsets = [0, 96], sizes = [2, 32], strides = [1, 1]} : vector<2x128xf32> to vector<2x32xf32>
    %93 = arith.mulf %86, %63 : vector<2x32xf32>
    %94 = arith.mulf %85, %91 : vector<2x32xf32>
    %95 = arith.addf %93, %94 : vector<2x32xf32>
    %96 = math.tanh %95 : vector<2x32xf32>
    %97 = arith.mulf %92, %96 : vector<2x32xf32>
    %98 = vector.extract_strided_slice %97 {offsets = [0, 0], sizes = [1, 32], strides = [1, 1]} : vector<2x32xf32> to vector<1x32xf32>
    %c0_i32_36 = arith.constant 0 : i32
    %99 = arith.addi %c0_i32_36, %c2_i32_29 : i32
    %100 = arith.index_cast %99 : i32 to index
    %c0_37 = arith.constant 0 : index
    %101 = vector.load %arg8[%100, %c0_37] : memref<16x32xf32, #tpu.memory_space<vmem>>, vector<1x32xf32>
    tpu.vector_store %arg8[%100, %c0_37], %98 {strides = array<i32>} : memref<16x32xf32, #tpu.memory_space<vmem>>, vector<1x32xf32>,
    %102 = vector.extract_strided_slice %97 {offsets = [1, 0], sizes = [1, 32], strides = [1, 1]} : vector<2x32xf32> to vector<1x32xf32>
    %c8_i32_38 = arith.constant 8 : i32
    %103 = arith.addi %c8_i32_38, %c2_i32_29 : i32
    %104 = arith.index_cast %103 : i32 to index
    %c0_39 = arith.constant 0 : index
    %105 = vector.load %arg8[%104, %c0_39] : memref<16x32xf32, #tpu.memory_space<vmem>>, vector<1x32xf32>
    tpu.vector_store %arg8[%104, %c0_39], %102 {strides = array<i32>} : memref<16x32xf32, #tpu.memory_space<vmem>>, vector<1x32xf32>,
    %c3_i32 = arith.constant 3 : i32
    %c2_i32_40 = arith.constant 2 : i32
    %106 = arith.muli %c3_i32, %c2_i32_40 : i32
    %107 = tpu.assume_multiple %106, 2 : i32
    %108 = arith.index_cast %107 : i32 to index
    %c0_41 = arith.constant 0 : index
    %109 = vector.load %arg7[%108, %c0_41] : memref<16x128xf32, #tpu.memory_space<vmem>>, vector<2x128xf32>
    %cst_42 = arith.constant dense<0.000000e+00> : vector<2x128xf32>
    %110 = tpu.matmul %97, %7, %cst_42 {dimension_numbers = #tpu.dot_dimension_numbers<[1], [0], [0], [1], [0, 0, 1, 1], [], []>} : vector<2x32xf32>, vector<32x128xf32>, vector<2x128xf32> -> vector<2x128xf32>
    %111 = arith.addf %109, %110 : vector<2x128xf32>
    %112 = arith.negf %111 : vector<2x128xf32>
    %113 = math.exp %112 : vector<2x128xf32>
    %cst_43 = arith.constant 1.000000e+00 : f32
    %114 = vector.broadcast %cst_43 : f32 to vector<2x128xf32>
    %115 = arith.addf %114, %113 : vector<2x128xf32>
    %116 = arith.divf %114, %115 : vector<2x128xf32>
    %117 = vector.extract_strided_slice %116 {offsets = [0, 0], sizes = [2, 32], strides = [1, 1]} : vector<2x128xf32> to vector<2x32xf32>
    %118 = vector.extract_strided_slice %116 {offsets = [0, 32], sizes = [2, 32], strides = [1, 1]} : vector<2x128xf32> to vector<2x32xf32>
    %119 = vector.extract_strided_slice %116 {offsets = [0, 64], sizes = [2, 32], strides = [1, 1]} : vector<2x128xf32> to vector<2x32xf32>
    %cst_44 = arith.constant 2.000000e+00 : f32
    %120 = vector.broadcast %cst_44 : f32 to vector<2x32xf32>
    %121 = arith.mulf %120, %119 : vector<2x32xf32>
    %cst_45 = arith.constant 1.000000e+00 : f32
    %122 = vector.broadcast %cst_45 : f32 to vector<2x32xf32>
    %123 = arith.subf %121, %122 : vector<2x32xf32>
    %124 = vector.extract_strided_slice %116 {offsets = [0, 96], sizes = [2, 32], strides = [1, 1]} : vector<2x128xf32> to vector<2x32xf32>
    %125 = arith.mulf %118, %95 : vector<2x32xf32>
    %126 = arith.mulf %117, %123 : vector<2x32xf32>
    %127 = arith.addf %125, %126 : vector<2x32xf32>
    %128 = math.tanh %127 : vector<2x32xf32>
    %129 = arith.mulf %124, %128 : vector<2x32xf32>
    %130 = vector.extract_strided_slice %129 {offsets = [0, 0], sizes = [1, 32], strides = [1, 1]} : vector<2x32xf32> to vector<1x32xf32>
    %c0_i32_46 = arith.constant 0 : i32
    %131 = arith.addi %c0_i32_46, %c3_i32 : i32
    %132 = arith.index_cast %131 : i32 to index
    %c0_47 = arith.constant 0 : index
    %133 = vector.load %arg8[%132, %c0_47] : memref<16x32xf32, #tpu.memory_space<vmem>>, vector<1x32xf32>
    tpu.vector_store %arg8[%132, %c0_47], %130 {strides = array<i32>} : memref<16x32xf32, #tpu.memory_space<vmem>>, vector<1x32xf32>,
    %134 = vector.extract_strided_slice %129 {offsets = [1, 0], sizes = [1, 32], strides = [1, 1]} : vector<2x32xf32> to vector<1x32xf32>
    %c8_i32_48 = arith.constant 8 : i32
    %135 = arith.addi %c8_i32_48, %c3_i32 : i32
    %136 = arith.index_cast %135 : i32 to index
    %c0_49 = arith.constant 0 : index
    %137 = vector.load %arg8[%136, %c0_49] : memref<16x32xf32, #tpu.memory_space<vmem>>, vector<1x32xf32>
    tpu.vector_store %arg8[%136, %c0_49], %134 {strides = array<i32>} : memref<16x32xf32, #tpu.memory_space<vmem>>, vector<1x32xf32>,
    %c4_i32 = arith.constant 4 : i32
    %c2_i32_50 = arith.constant 2 : i32
    %138 = arith.muli %c4_i32, %c2_i32_50 : i32
    %139 = tpu.assume_multiple %138, 2 : i32
    %140 = arith.index_cast %139 : i32 to index
    %c0_51 = arith.constant 0 : index
    %141 = vector.load %arg7[%140, %c0_51] : memref<16x128xf32, #tpu.memory_space<vmem>>, vector<2x128xf32>
    %cst_52 = arith.constant dense<0.000000e+00> : vector<2x128xf32>
    %142 = tpu.matmul %129, %7, %cst_52 {dimension_numbers = #tpu.dot_dimension_numbers<[1], [0], [0], [1], [0, 0, 1, 1], [], []>} : vector<2x32xf32>, vector<32x128xf32>, vector<2x128xf32> -> vector<2x128xf32>
    %143 = arith.addf %141, %142 : vector<2x128xf32>
    %144 = arith.negf %143 : vector<2x128xf32>
    %145 = math.exp %144 : vector<2x128xf32>
    %cst_53 = arith.constant 1.000000e+00 : f32
    %146 = vector.broadcast %cst_53 : f32 to vector<2x128xf32>
    %147 = arith.addf %146, %145 : vector<2x128xf32>
    %148 = arith.divf %146, %147 : vector<2x128xf32>
    %149 = vector.extract_strided_slice %148 {offsets = [0, 0], sizes = [2, 32], strides = [1, 1]} : vector<2x128xf32> to vector<2x32xf32>
    %150 = vector.extract_strided_slice %148 {offsets = [0, 32], sizes = [2, 32], strides = [1, 1]} : vector<2x128xf32> to vector<2x32xf32>
    %151 = vector.extract_strided_slice %148 {offsets = [0, 64], sizes = [2, 32], strides = [1, 1]} : vector<2x128xf32> to vector<2x32xf32>
    %cst_54 = arith.constant 2.000000e+00 : f32
    %152 = vector.broadcast %cst_54 : f32 to vector<2x32xf32>
    %153 = arith.mulf %152, %151 : vector<2x32xf32>
    %cst_55 = arith.constant 1.000000e+00 : f32
    %154 = vector.broadcast %cst_55 : f32 to vector<2x32xf32>
    %155 = arith.subf %153, %154 : vector<2x32xf32>
    %156 = vector.extract_strided_slice %148 {offsets = [0, 96], sizes = [2, 32], strides = [1, 1]} : vector<2x128xf32> to vector<2x32xf32>
    %157 = arith.mulf %150, %127 : vector<2x32xf32>
    %158 = arith.mulf %149, %155 : vector<2x32xf32>
    %159 = arith.addf %157, %158 : vector<2x32xf32>
    %160 = math.tanh %159 : vector<2x32xf32>
    %161 = arith.mulf %156, %160 : vector<2x32xf32>
    %162 = vector.extract_strided_slice %161 {offsets = [0, 0], sizes = [1, 32], strides = [1, 1]} : vector<2x32xf32> to vector<1x32xf32>
    %c0_i32_56 = arith.constant 0 : i32
    %163 = arith.addi %c0_i32_56, %c4_i32 : i32
    %164 = arith.index_cast %163 : i32 to index
    %c0_57 = arith.constant 0 : index
    %165 = vector.load %arg8[%164, %c0_57] : memref<16x32xf32, #tpu.memory_space<vmem>>, vector<1x32xf32>
    tpu.vector_store %arg8[%164, %c0_57], %162 {strides = array<i32>} : memref<16x32xf32, #tpu.memory_space<vmem>>, vector<1x32xf32>,
    %166 = vector.extract_strided_slice %161 {offsets = [1, 0], sizes = [1, 32], strides = [1, 1]} : vector<2x32xf32> to vector<1x32xf32>
    %c8_i32_58 = arith.constant 8 : i32
    %167 = arith.addi %c8_i32_58, %c4_i32 : i32
    %168 = arith.index_cast %167 : i32 to index
    %c0_59 = arith.constant 0 : index
    %169 = vector.load %arg8[%168, %c0_59] : memref<16x32xf32, #tpu.memory_space<vmem>>, vector<1x32xf32>
    tpu.vector_store %arg8[%168, %c0_59], %166 {strides = array<i32>} : memref<16x32xf32, #tpu.memory_space<vmem>>, vector<1x32xf32>,
    %c5_i32 = arith.constant 5 : i32
    %c2_i32_60 = arith.constant 2 : i32
    %170 = arith.muli %c5_i32, %c2_i32_60 : i32
    %171 = tpu.assume_multiple %170, 2 : i32
    %172 = arith.index_cast %171 : i32 to index
    %c0_61 = arith.constant 0 : index
    %173 = vector.load %arg7[%172, %c0_61] : memref<16x128xf32, #tpu.memory_space<vmem>>, vector<2x128xf32>
    %cst_62 = arith.constant dense<0.000000e+00> : vector<2x128xf32>
    %174 = tpu.matmul %161, %7, %cst_62 {dimension_numbers = #tpu.dot_dimension_numbers<[1], [0], [0], [1], [0, 0, 1, 1], [], []>} : vector<2x32xf32>, vector<32x128xf32>, vector<2x128xf32> -> vector<2x128xf32>
    %175 = arith.addf %173, %174 : vector<2x128xf32>
    %176 = arith.negf %175 : vector<2x128xf32>
    %177 = math.exp %176 : vector<2x128xf32>
    %cst_63 = arith.constant 1.000000e+00 : f32
    %178 = vector.broadcast %cst_63 : f32 to vector<2x128xf32>
    %179 = arith.addf %178, %177 : vector<2x128xf32>
    %180 = arith.divf %178, %179 : vector<2x128xf32>
    %181 = vector.extract_strided_slice %180 {offsets = [0, 0], sizes = [2, 32], strides = [1, 1]} : vector<2x128xf32> to vector<2x32xf32>
    %182 = vector.extract_strided_slice %180 {offsets = [0, 32], sizes = [2, 32], strides = [1, 1]} : vector<2x128xf32> to vector<2x32xf32>
    %183 = vector.extract_strided_slice %180 {offsets = [0, 64], sizes = [2, 32], strides = [1, 1]} : vector<2x128xf32> to vector<2x32xf32>
    %cst_64 = arith.constant 2.000000e+00 : f32
    %184 = vector.broadcast %cst_64 : f32 to vector<2x32xf32>
    %185 = arith.mulf %184, %183 : vector<2x32xf32>
    %cst_65 = arith.constant 1.000000e+00 : f32
    %186 = vector.broadcast %cst_65 : f32 to vector<2x32xf32>
    %187 = arith.subf %185, %186 : vector<2x32xf32>
    %188 = vector.extract_strided_slice %180 {offsets = [0, 96], sizes = [2, 32], strides = [1, 1]} : vector<2x128xf32> to vector<2x32xf32>
    %189 = arith.mulf %182, %159 : vector<2x32xf32>
    %190 = arith.mulf %181, %187 : vector<2x32xf32>
    %191 = arith.addf %189, %190 : vector<2x32xf32>
    %192 = math.tanh %191 : vector<2x32xf32>
    %193 = arith.mulf %188, %192 : vector<2x32xf32>
    %194 = vector.extract_strided_slice %193 {offsets = [0, 0], sizes = [1, 32], strides = [1, 1]} : vector<2x32xf32> to vector<1x32xf32>
    %c0_i32_66 = arith.constant 0 : i32
    %195 = arith.addi %c0_i32_66, %c5_i32 : i32
    %196 = arith.index_cast %195 : i32 to index
    %c0_67 = arith.constant 0 : index
    %197 = vector.load %arg8[%196, %c0_67] : memref<16x32xf32, #tpu.memory_space<vmem>>, vector<1x32xf32>
    tpu.vector_store %arg8[%196, %c0_67], %194 {strides = array<i32>} : memref<16x32xf32, #tpu.memory_space<vmem>>, vector<1x32xf32>,
    %198 = vector.extract_strided_slice %193 {offsets = [1, 0], sizes = [1, 32], strides = [1, 1]} : vector<2x32xf32> to vector<1x32xf32>
    %c8_i32_68 = arith.constant 8 : i32
    %199 = arith.addi %c8_i32_68, %c5_i32 : i32
    %200 = arith.index_cast %199 : i32 to index
    %c0_69 = arith.constant 0 : index
    %201 = vector.load %arg8[%200, %c0_69] : memref<16x32xf32, #tpu.memory_space<vmem>>, vector<1x32xf32>
    tpu.vector_store %arg8[%200, %c0_69], %198 {strides = array<i32>} : memref<16x32xf32, #tpu.memory_space<vmem>>, vector<1x32xf32>,
    %c6_i32 = arith.constant 6 : i32
    %c2_i32_70 = arith.constant 2 : i32
    %202 = arith.muli %c6_i32, %c2_i32_70 : i32
    %203 = tpu.assume_multiple %202, 2 : i32
    %204 = arith.index_cast %203 : i32 to index
    %c0_71 = arith.constant 0 : index
    %205 = vector.load %arg7[%204, %c0_71] : memref<16x128xf32, #tpu.memory_space<vmem>>, vector<2x128xf32>
    %cst_72 = arith.constant dense<0.000000e+00> : vector<2x128xf32>
    %206 = tpu.matmul %193, %7, %cst_72 {dimension_numbers = #tpu.dot_dimension_numbers<[1], [0], [0], [1], [0, 0, 1, 1], [], []>} : vector<2x32xf32>, vector<32x128xf32>, vector<2x128xf32> -> vector<2x128xf32>
    %207 = arith.addf %205, %206 : vector<2x128xf32>
    %208 = arith.negf %207 : vector<2x128xf32>
    %209 = math.exp %208 : vector<2x128xf32>
    %cst_73 = arith.constant 1.000000e+00 : f32
    %210 = vector.broadcast %cst_73 : f32 to vector<2x128xf32>
    %211 = arith.addf %210, %209 : vector<2x128xf32>
    %212 = arith.divf %210, %211 : vector<2x128xf32>
    %213 = vector.extract_strided_slice %212 {offsets = [0, 0], sizes = [2, 32], strides = [1, 1]} : vector<2x128xf32> to vector<2x32xf32>
    %214 = vector.extract_strided_slice %212 {offsets = [0, 32], sizes = [2, 32], strides = [1, 1]} : vector<2x128xf32> to vector<2x32xf32>
    %215 = vector.extract_strided_slice %212 {offsets = [0, 64], sizes = [2, 32], strides = [1, 1]} : vector<2x128xf32> to vector<2x32xf32>
    %cst_74 = arith.constant 2.000000e+00 : f32
    %216 = vector.broadcast %cst_74 : f32 to vector<2x32xf32>
    %217 = arith.mulf %216, %215 : vector<2x32xf32>
    %cst_75 = arith.constant 1.000000e+00 : f32
    %218 = vector.broadcast %cst_75 : f32 to vector<2x32xf32>
    %219 = arith.subf %217, %218 : vector<2x32xf32>
    %220 = vector.extract_strided_slice %212 {offsets = [0, 96], sizes = [2, 32], strides = [1, 1]} : vector<2x128xf32> to vector<2x32xf32>
    %221 = arith.mulf %214, %191 : vector<2x32xf32>
    %222 = arith.mulf %213, %219 : vector<2x32xf32>
    %223 = arith.addf %221, %222 : vector<2x32xf32>
    %224 = math.tanh %223 : vector<2x32xf32>
    %225 = arith.mulf %220, %224 : vector<2x32xf32>
    %226 = vector.extract_strided_slice %225 {offsets = [0, 0], sizes = [1, 32], strides = [1, 1]} : vector<2x32xf32> to vector<1x32xf32>
    %c0_i32_76 = arith.constant 0 : i32
    %227 = arith.addi %c0_i32_76, %c6_i32 : i32
    %228 = arith.index_cast %227 : i32 to index
    %c0_77 = arith.constant 0 : index
    %229 = vector.load %arg8[%228, %c0_77] : memref<16x32xf32, #tpu.memory_space<vmem>>, vector<1x32xf32>
    tpu.vector_store %arg8[%228, %c0_77], %226 {strides = array<i32>} : memref<16x32xf32, #tpu.memory_space<vmem>>, vector<1x32xf32>,
    %230 = vector.extract_strided_slice %225 {offsets = [1, 0], sizes = [1, 32], strides = [1, 1]} : vector<2x32xf32> to vector<1x32xf32>
    %c8_i32_78 = arith.constant 8 : i32
    %231 = arith.addi %c8_i32_78, %c6_i32 : i32
    %232 = arith.index_cast %231 : i32 to index
    %c0_79 = arith.constant 0 : index
    %233 = vector.load %arg8[%232, %c0_79] : memref<16x32xf32, #tpu.memory_space<vmem>>, vector<1x32xf32>
    tpu.vector_store %arg8[%232, %c0_79], %230 {strides = array<i32>} : memref<16x32xf32, #tpu.memory_space<vmem>>, vector<1x32xf32>,
    %c7_i32 = arith.constant 7 : i32
    %c2_i32_80 = arith.constant 2 : i32
    %234 = arith.muli %c7_i32, %c2_i32_80 : i32
    %235 = tpu.assume_multiple %234, 2 : i32
    %236 = arith.index_cast %235 : i32 to index
    %c0_81 = arith.constant 0 : index
    %237 = vector.load %arg7[%236, %c0_81] : memref<16x128xf32, #tpu.memory_space<vmem>>, vector<2x128xf32>
    %cst_82 = arith.constant dense<0.000000e+00> : vector<2x128xf32>
    %238 = tpu.matmul %225, %7, %cst_82 {dimension_numbers = #tpu.dot_dimension_numbers<[1], [0], [0], [1], [0, 0, 1, 1], [], []>} : vector<2x32xf32>, vector<32x128xf32>, vector<2x128xf32> -> vector<2x128xf32>
    %239 = arith.addf %237, %238 : vector<2x128xf32>
    %240 = arith.negf %239 : vector<2x128xf32>
    %241 = math.exp %240 : vector<2x128xf32>
    %cst_83 = arith.constant 1.000000e+00 : f32
    %242 = vector.broadcast %cst_83 : f32 to vector<2x128xf32>
    %243 = arith.addf %242, %241 : vector<2x128xf32>
    %244 = arith.divf %242, %243 : vector<2x128xf32>
    %245 = vector.extract_strided_slice %244 {offsets = [0, 0], sizes = [2, 32], strides = [1, 1]} : vector<2x128xf32> to vector<2x32xf32>
    %246 = vector.extract_strided_slice %244 {offsets = [0, 32], sizes = [2, 32], strides = [1, 1]} : vector<2x128xf32> to vector<2x32xf32>
    %247 = vector.extract_strided_slice %244 {offsets = [0, 64], sizes = [2, 32], strides = [1, 1]} : vector<2x128xf32> to vector<2x32xf32>
    %cst_84 = arith.constant 2.000000e+00 : f32
    %248 = vector.broadcast %cst_84 : f32 to vector<2x32xf32>
    %249 = arith.mulf %248, %247 : vector<2x32xf32>
    %cst_85 = arith.constant 1.000000e+00 : f32
    %250 = vector.broadcast %cst_85 : f32 to vector<2x32xf32>
    %251 = arith.subf %249, %250 : vector<2x32xf32>
    %252 = vector.extract_strided_slice %244 {offsets = [0, 96], sizes = [2, 32], strides = [1, 1]} : vector<2x128xf32> to vector<2x32xf32>
    %253 = arith.mulf %246, %223 : vector<2x32xf32>
    %254 = arith.mulf %245, %251 : vector<2x32xf32>
    %255 = arith.addf %253, %254 : vector<2x32xf32>
    %256 = math.tanh %255 : vector<2x32xf32>
    %257 = arith.mulf %252, %256 : vector<2x32xf32>
    %258 = vector.extract_strided_slice %257 {offsets = [0, 0], sizes = [1, 32], strides = [1, 1]} : vector<2x32xf32> to vector<1x32xf32>
    %c0_i32_86 = arith.constant 0 : i32
    %259 = arith.addi %c0_i32_86, %c7_i32 : i32
    %260 = arith.index_cast %259 : i32 to index
    %c0_87 = arith.constant 0 : index
    %261 = vector.load %arg8[%260, %c0_87] : memref<16x32xf32, #tpu.memory_space<vmem>>, vector<1x32xf32>
    tpu.vector_store %arg8[%260, %c0_87], %258 {strides = array<i32>} : memref<16x32xf32, #tpu.memory_space<vmem>>, vector<1x32xf32>,
    %262 = vector.extract_strided_slice %257 {offsets = [1, 0], sizes = [1, 32], strides = [1, 1]} : vector<2x32xf32> to vector<1x32xf32>
    %c8_i32_88 = arith.constant 8 : i32
    %263 = arith.addi %c8_i32_88, %c7_i32 : i32
    %264 = arith.index_cast %263 : i32 to index
    %c0_89 = arith.constant 0 : index
    %265 = vector.load %arg8[%264, %c0_89] : memref<16x32xf32, #tpu.memory_space<vmem>>, vector<1x32xf32>
    tpu.vector_store %arg8[%264, %c0_89], %262 {strides = array<i32>} : memref<16x32xf32, #tpu.memory_space<vmem>>, vector<1x32xf32>,
    %c8_i32_90 = arith.constant 8 : i32
    %c0_91 = arith.constant 0 : index
    %c0_92 = arith.constant 0 : index
    %266 = vector.load %arg8[%c0_91, %c0_92] : memref<16x32xf32, #tpu.memory_space<vmem>>, vector<16x32xf32>
    %c0_93 = arith.constant 0 : index
    %c0_94 = arith.constant 0 : index
    %267 = vector.load %arg4[%c0_93, %c0_94] : memref<32x128xf32, #tpu.memory_space<vmem>>, vector<32x128xf32>
    %cst_95 = arith.constant dense<0.000000e+00> : vector<16x128xf32>
    %268 = tpu.matmul %266, %267, %cst_95 {dimension_numbers = #tpu.dot_dimension_numbers<[1], [0], [0], [1], [0, 0, 1, 1], [], []>} : vector<16x32xf32>, vector<32x128xf32>, vector<16x128xf32> -> vector<16x128xf32>
    %c0_96 = arith.constant 0 : index
    %c0_97 = arith.constant 0 : index
    %269 = vector.load %arg5[%c0_96, %c0_97] : memref<1x128xf32, #tpu.memory_space<vmem>>, vector<1x128xf32>
    %270 = vector.broadcast %269 : vector<1x128xf32> to vector<16x128xf32>
    %271 = arith.addf %268, %270 : vector<16x128xf32>
    %c0_98 = arith.constant 0 : index
    %c0_99 = arith.constant 0 : index
    %272 = vector.load %arg6[%c0_98, %c0_99] : memref<16x128xf32, #tpu.memory_space<vmem>>, vector<16x128xf32>
    tpu.vector_store %arg6[%c0_98, %c0_99], %271 {strides = array<i32>} : memref<16x128xf32, #tpu.memory_space<vmem>>, vector<16x128xf32>,
    return
  }
}

</mosaic_0001>

<bundles_post_ra>
// kernel: tpu_custom_call.1
= control target key start
LH: loop header
LB: loop body
LE: loop exit
PB: predicated region body
PF: predicated region fallthrough
CT: control target
= control target key end

     0   :  { %11 = vsyncpa [#allocation5], 0  ;;  %s1832_s0 = inlined_call_operand.hbm [shape: f32[16,32], index: 0, kind: input, shape index: {}]   ;;  %s1833_s1 = inlined_call_operand.hbm [shape: f32[32,128], index: 1, kind: input, shape index: {}]   ;;  %s1834_s2 = inlined_call_operand.hbm [shape: f32[32,128], index: 2, kind: input, shape index: {}]   ;;  %s1835_s3 = inlined_call_operand.vmem [shape: f32[1,128], index: 3, kind: input, shape index: {}]   ;;  %s1836_s4 = inlined_call_operand.hbm [shape: f32[32,128], index: 4, kind: input, shape index: {}]   ;;  %s1837_s5 = inlined_call_operand.vmem [shape: f32[1,128], index: 5, kind: input, shape index: {}]   ;;  %s1838_s6 = inlined_call_operand.hbm [shape: f32[16,128], index: 6, kind: output, shape index: {}]  }
   0x1   :  { %12 = vsyncpa [#allocation8], 0 }
   0x2   :  { %13 = vsyncpa [#allocation11], 0 }
   0x3   :  { %14 = vsyncpa [#allocation6], 0  ;;  %s1578_s21 = smov [#allocation7]   ;;  %s1579_s23 = smov [#allocation4]  }
   0x4   :  { %s32_s22 = sshll.u32 %s1578_s21, 4  ;;  %s20_s24 = sshll.u32 %s1579_s23, 4  ;;  %s33_s22 = int_to_ptr.vmem [resolvable:$true] %s32_s22  ;;  %s1625_s24 = int_to_ptr.vmem [resolvable:$true] %s20_s24 }
   0x5   :  { %s1460_s27 = scalar_lea.hbm %s1833_s1, 512 }
   0x6   :  { %p1461_p0 = scmp.ne.s32.totalorder %s1833_s1, %s1460_s27  ;;  %p1464_p1 = scmp.lt.u32.totalorder %s1460_s27, %s1833_s1 }
   0x8   :  { %p1466_p2 = pnand %p1464_p1, %p1461_p0 }
   0xa   :  { %1469 = shalt.err (!%p1466_p2)
}
   0xb   :  { %s1470_s8 = scalar_lea.vmem %s33_s22, 512  ;;  %p1475_p4 = scmp.lt.s32.totalorder %s33_s22, %s33_s22 }
   0xc   :  { %p1471_p3 = scmp.ne.s32.totalorder %s33_s22, %s1470_s8  ;;  %p1476_p5 = scmp.lt.s32.totalorder %s1470_s8, %s1470_s8 }
   0xe   :  { %p1477_p6 = por %p1476_p5, %p1475_p4 }
  0x10   :  { %p1478_p7 = pnand %p1477_p6, %p1471_p3 }
  0x12   :  { %1481 = shalt.err (!%p1478_p7)
}
  0x13   :  { %s1580_s9 = smov 128   ;;  %s1581_s10 = smov 8  }
  0x14   :  { %38 = dma.hbm_to_vmem [thread:$0]  %s1833_s1, 512, %s33_s22, [#allocation8], %s1580_s9, %s1580_s9, %s1581_s10  }
  0x15   :  { %s1482_s15 = scalar_lea.hbm %s1832_s0, 256 }
  0x16   :  { %p1483_p8 = scmp.ne.s32.totalorder %s1832_s0, %s1482_s15  ;;  %p1486_p9 = scmp.lt.u32.totalorder %s1482_s15, %s1832_s0 }
  0x18   :  { %p1488_p10 = pnand %p1486_p9, %p1483_p8 }
  0x1a   :  { %1491 = shalt.err (!%p1488_p10)
}
  0x1b   :  { %s1492_s20 = scalar_lea.vmem %s1625_s24, 256  ;;  %p1497_p12 = scmp.lt.s32.totalorder %s1625_s24, %s1625_s24 }
  0x1c   :  { %p1493_p11 = scmp.ne.s32.totalorder %s1625_s24, %s1492_s20  ;;  %p1498_p13 = scmp.lt.s32.totalorder %s1492_s20, %s1492_s20 }
  0x1e   :  { %p1499_p0 = por %p1498_p13, %p1497_p12 }
  0x20   :  { %p1500_p1 = pnand %p1499_p0, %p1493_p11 }
  0x22   :  { %1503 = shalt.err (!%p1500_p1)
}
  0x23   :  { %26 = dma.hbm_to_vmem [thread:$0]  %s1832_s0, 256, %s1625_s24, [#allocation5], %s1580_s9, %s1580_s9, %s1581_s10  }
  0x24   :  { %s1582_s22 = smov [#allocation9]   ;;  %s1583_s25 = smov [#allocation10]  }
  0x25   :  { %s44_s23 = sshll.u32 %s1582_s22, 4  ;;  %s58_s26 = sshll.u32 %s1583_s25, 4  ;;  %s45_s23 = int_to_ptr.vmem [resolvable:$true] %s44_s23  ;;  %s1662_s26 = int_to_ptr.vmem [resolvable:$true] %s58_s26 }
  0x26   :  { %s1504_s29 = scalar_lea.hbm %s1834_s2, 512 }
  0x27   :  { %p1505_p2 = scmp.ne.s32.totalorder %s1834_s2, %s1504_s29  ;;  %p1508_p3 = scmp.lt.u32.totalorder %s1504_s29, %s1834_s2 }
  0x29   :  { %p1510_p4 = pnand %p1508_p3, %p1505_p2 }
  0x2b   :  { %1513 = shalt.err (!%p1510_p4)
}
  0x2c   :  { %s1514_s0 = scalar_lea.vmem %s45_s23, 512  ;;  %p1519_p6 = scmp.lt.s32.totalorder %s45_s23, %s45_s23 }
  0x2d   :  { %p1515_p5 = scmp.ne.s32.totalorder %s45_s23, %s1514_s0  ;;  %p1520_p7 = scmp.lt.s32.totalorder %s1514_s0, %s1514_s0 }
  0x2f   :  { %p1521_p8 = por %p1520_p7, %p1519_p6 }
  0x31   :  { %p1522_p9 = pnand %p1521_p8, %p1515_p5 }
  0x33   :  { %1525 = shalt.err (!%p1522_p9)
}
  0x34   :  { %50 = dma.hbm_to_vmem [thread:$0]  %s1834_s2, 512, %s45_s23, [#allocation8], %s1580_s9, %s1580_s9, %s1581_s10  }
  0x35   :  { %s1526_s15 = scalar_lea.hbm %s1836_s4, 512 }
  0x36   :  { %p1527_p10 = scmp.ne.s32.totalorder %s1836_s4, %s1526_s15  ;;  %p1530_p11 = scmp.lt.u32.totalorder %s1526_s15, %s1836_s4 }
  0x38   :  { %p1532_p12 = pnand %p1530_p11, %p1527_p10 }
  0x3a   :  { %1535 = shalt.err (!%p1532_p12)
}
  0x3b   :  { %s1536_s20 = scalar_lea.vmem %s1662_s26, 512  ;;  %p1541_p0 = scmp.lt.s32.totalorder %s1662_s26, %s1662_s26 }
  0x3c   :  { %p1537_p13 = scmp.ne.s32.totalorder %s1662_s26, %s1536_s20  ;;  %p1542_p1 = scmp.lt.s32.totalorder %s1536_s20, %s1536_s20 }
  0x3e   :  { %p1543_p2 = por %p1542_p1, %p1541_p0 }
  0x40   :  { %p1544_p3 = pnand %p1543_p2, %p1537_p13 }
  0x42   :  { %1547 = shalt.err (!%p1544_p3)
}
  0x43   :  { %64 = dma.hbm_to_vmem [thread:$0]  %s1836_s4, 512, %s1662_s26, [#allocation11], %s1580_s9, %s1580_s9, %s1581_s10  }
  0x44   :  { %1570 = dma.done.wait [#allocation5], 256  }
  0x45   :  { %1571 = vsyncadd [#allocation5], 4294967040 }
  0x46   :  { %1572 = dma.done.wait [#allocation8], 1024  }
  0x47   :  { %1573 = vsyncadd [#allocation8], 4294966272 }
  0x48   :  { %1574 = dma.done.wait [#allocation11], 512  }
  0x49   :  { %1575 = vsyncadd [#allocation11], 4294966784  ;;  %v1584_v0 = vmov 0.0|0.0   ;;  %vm1585_vm0 = vmmov 0   ;;  %v1586_v1 = vmov 0.0   ;;  %vm92_vm1 = vcmask 261120  }
  0x4a   :  { %1344 = vmatprep.subr.bf16.mxu1 %v1584_v0  ;;  %1245 = vmatprep.mubr.msk.f32.mxu1 %vm1585_vm0, %v1586_v1  ;;  %v81_v2 = vld [vmem:[#allocation7] sm:$0xff]  ;;  %v82_v3 = vld [vmem:[#allocation7 + $0x8] sm:$0xff]  ;;  %v83_v4 = vld [vmem:[#allocation7 + $0x10] sm:$0xff]  ;;  %s1587_s22 = smov 64   ;;  %vm284_vm2 = vcmask 253952   ;;  %vm286_vm3 = vcmask 254977  }
  0x4b   :  { %v1336_v5 = vpack.c.bf16 %v82_v3, %v81_v2  ;;  %v84_v6 = vld [vmem:[#allocation7 + $0x18] sm:$0xff]  ;;  %v79_v7 = vld [vmem:[#allocation4] sm:$0xff]  ;;  %v176_v9 = vld [vmem:[#allocation9] sm:$0xff]  ;;  %s1589_s26 = smov [#allocation12]  }
  0x4c   :  { %v1340_v8 = vpack.c.bf16 %v84_v6, %v83_v4  ;;  %1234 = vmatprep.mubr.msk.f32.mxu0 %vm92_vm1, %v79_v7  ;;  %v177_v10 = vld [vmem:[#allocation9 + $0x8] sm:$0xff]  ;;  %v178_v11 = vld [vmem:[#allocation9 + $0x10] sm:$0xff]  ;;  %v179_v13 = vld [vmem:[#allocation9 + $0x18] sm:$0xff]  ;;  %s1131_s27 = sshll.u32 %s1589_s26, 4  ;;  %s1132_s27 = int_to_ptr.vmem [resolvable:$true] %s1131_s27 }
  0x4d   :  { %1337 = vmatprep.subr.bf16.mxu0 %v1336_v5  ;;  %v1703_v12 = vpack.c.bf16 %v177_v10, %v176_v9  ;;  %v1706_v14 = vpack.c.bf16 %v179_v13, %v178_v11  ;;  %v80_v15 = vld [vmem:[#allocation4 + $0x8] sm:$0xff]  ;;  %v1145_v16 = vld [vmem:[%s1835_s3] ss:$0 sm:$0xff]  ;;  %s1588_s3 = smov 32   ;;  %s1548_s28 = scalar_lea.vmem %s1132_s27, 256 }
  0x4e   :  { %1339 = vmatpush3.bf16.msra.mxu0 %v1336_v5  ;;  %p1549_p4 = scmp.ne.s32.totalorder %s1132_s27, %s1548_s28  ;;  %p1553_p5 = scmp.lt.s32.totalorder %s1132_s27, %s1132_s27 }
  0x4f   :  { %1341 = vmatprep.subr.bf16.mxu0 %v1340_v8  ;;  %1346 = vmatpush3.bf16.msra.mxu1 %v1703_v12  ;;  %p1554_p6 = scmp.lt.s32.totalorder %s1548_s28, %s1548_s28 }
  0x50   :  { %1347 = vmatprep.subr.bf16.mxu1 %v1584_v0 }
  0x51   :  { %p1555_p7 = por %p1554_p6, %p1553_p5 }
  0x52   :  { %1343 = vmatpush3.bf16.msra.mxu0 %v1340_v8 }
  0x53   :  { %1349 = vmatpush3.bf16.msra.mxu1 %v1706_v14  ;;  %1350 = vmatprep.subr.bf16.mxu0 %v1584_v0  ;;  %p1556_p8 = pnand %p1555_p7, %p1549_p4 }
  0x54   :  { %1356 = vmatprep.subr.bf16.mxu1 %v1584_v0 }
  0x55   :  { %1235 = vmatmul.mubr.msk.f32.vlgmr.msra.gmra.mrb[0].mxu0 %vm92_vm1, %v80_v15 }
  0x56   :  { %1246 = vmatmul.mubr.f32.vlgmr.msra.gmra.mrb[0].mxu1 %v1586_v1  ;;  %1352 = vmatpush3.bf16.msra.mxu0 %v1703_v12 }
  0x57   :  { %1353 = vmatprep.subr.bf16.mxu0 %v1584_v0  ;;  %1256 = vmatprep.mubr.msk.f32.mxu0 %vm1585_vm0, %v1586_v1 }
  0x58   :  { %1358 = vmatpush3.bf16.msra.mxu1 %v1703_v12  ;;  %1267 = vmatprep.mubr.msk.f32.mxu1 %vm1585_vm0, %v1586_v1 }
  0x59   :  { %1359 = vmatprep.subr.bf16.mxu1 %v1584_v0 }
  0x5a   :  { %1355 = vmatpush3.bf16.msra.mxu0 %v1706_v14 }
  0x5b   :  { %1362 = vmatprep.subr.bf16.mxu0 %v1584_v0 }
  0x5c   :  { %1361 = vmatpush3.bf16.msra.mxu1 %v1706_v14 }
  0x5d   :  { %1368 = vmatprep.subr.bf16.mxu1 %v1584_v0 }
 0x128   :  { %v1236_v17 = vpop.f32.mrb[0].mxu0 }
 0x129   :  { %v171_v18 = vadd.f32 %v1236_v17, %v1145_v16  ;;  %v165_v19 = vpop.f32.mrb[1].mxu0  ;;  %v250_v20 = vpop.f32.mrb[0].mxu1 }
 0x12a   :  { %v166_v21 = vadd.f32 %v1145_v16, %v165_v19  ;;  %v1247_v22 = vpop.f32.mrb[1].mxu1 }
 0x12b   :  { %175 = vst [vmem:[#allocation2 + $0x8] sm:$0xff] %v171_v18 }
 0x12c   :  { %174 = vst [vmem:[#allocation2] sm:$0xff] %v166_v21 }
 0x133   :  { %v180_v23 = vld [vmem:[#allocation2] sm:$0x3]  ;;  %v289_v40 = vld [vmem:[#allocation2 + $0x2] sm:$0x3]  ;;  %v395_v59 = vld [vmem:[#allocation2 + $0x4] sm:$0x3] }
 0x134   :  { %v254_v24 = vadd.f32 %v250_v20, %v180_v23  ;;  %v501_v18 = vld [vmem:[#allocation2 + $0x6] sm:$0x3] }
 0x136   :  { %v1148_v25 = vmul.f32 -1.442695, %v254_v24 }
 0x138   :  { %1412 = vpow2.f32 %v1148_v25 }
 0x142   :  { %v1413_v26 = vpop.eup %1412 }
 0x143   :  { %v258_v27 = vadd.f32 1.0, %v1413_v26 }
 0x145   :  { %1414 = vrcp.f32 %v258_v27 }
 0x14f   :  { %v1415_v28 = vpop.eup %1414 }
 0x150   :  { %v261_v29 = vmul.f32 2.0, %v1415_v28  ;;  %v263_v33 = vmul.f32 0.0, %v1415_v28 }
 0x152   :  { %v1149_v30 = vadd.f32 -1.0, %v261_v29 }
 0x154   :  { %265 = vrot.lane.b32.xlu0 %v1149_v30, %s1587_s22 }
 0x1c6   :  { %v266_v31 = vpop.permute.xlu0 %265 }
 0x1c7   :  { %v268_v32 = vmul.f32 %v1415_v28, %v266_v31 }
 0x1c9   :  { %270 = vrot.lane.b32.xlu0 %v268_v32, %s1588_s3 }
 0x23b   :  { %v271_v34 = vpop.permute.xlu0 %270 }
 0x23c   :  { %v273_v35 = vadd.f32 %v271_v34, %v263_v33 }
 0x23e   :  { %1416 = vtanh.f32 %v273_v35 }
 0x248   :  { %v1417_v36 = vpop.eup %1416 }
 0x249   :  { %276 = vrot.lane.b32.xlu1 %v1417_v36, %s1587_s22 }
 0x2bb   :  { %v277_v37 = vpop.permute.xlu1 %276 }
 0x2bc   :  { %v279_v38 = vmul.f32 %v1415_v28, %v277_v37  ;;  %v607_v37 = vld [vmem:[#allocation2 + $0x8] sm:$0x3] }
 0x2be   :  { %281 = vrot.lane.b32.xlu1 %v279_v38, %s1588_s3 }
 0x330   :  { %v282_v39 = vpop.permute.xlu1 %281 }
 0x331   :  { %285 = vst.msk [vmem:[#allocation3] sm:$0x1] %vm284_vm2, %v282_v39  ;;  %1257 = vmatmul.mubr.msk.f32.vlgmr.msra.gmra.mrb[2].mxu0 %vm92_vm1, %v282_v39 }
 0x332   :  { %287 = vst.msk [vmem:[#allocation3 + $0x7] sm:$0x2] %vm286_vm3, %v282_v39  ;;  %1364 = vmatpush3.bf16.msra.mxu0 %v1703_v12  ;;  %1278 = vmatprep.mubr.msk.f32.mxu0 %vm1585_vm0, %v1586_v1 }
 0x333   :  { %1365 = vmatprep.subr.bf16.mxu0 %v1584_v0 }
 0x336   :  { %1367 = vmatpush3.bf16.msra.mxu0 %v1706_v14 }
 0x337   :  { %1374 = vmatprep.subr.bf16.mxu0 %v1584_v0 }
 0x404   :  { %v358_v41 = vpop.f32.mrb[2].mxu0 }
 0x405   :  { %v362_v42 = vadd.f32 %v358_v41, %v289_v40  ;;  %v1258_v43 = vpop.f32.mrb[3].mxu0 }
 0x407   :  { %v1151_v44 = vmul.f32 -1.442695, %v362_v42 }
 0x409   :  { %1418 = vpow2.f32 %v1151_v44 }
 0x413   :  { %v1419_v45 = vpop.eup %1418 }
 0x414   :  { %v366_v46 = vadd.f32 1.0, %v1419_v45 }
 0x416   :  { %1420 = vrcp.f32 %v366_v46 }
 0x420   :  { %v1421_v47 = vpop.eup %1420 }
 0x421   :  { %v369_v48 = vmul.f32 2.0, %v1421_v47  ;;  %v371_v52 = vmul.f32 %v1421_v47, %v273_v35 }
 0x423   :  { %v1152_v49 = vadd.f32 -1.0, %v369_v48 }
 0x425   :  { %373 = vrot.lane.b32.xlu0 %v1152_v49, %s1587_s22 }
 0x497   :  { %v374_v50 = vpop.permute.xlu0 %373 }
 0x498   :  { %v376_v51 = vmul.f32 %v1421_v47, %v374_v50 }
 0x49a   :  { %378 = vrot.lane.b32.xlu1 %v376_v51, %s1588_s3 }
 0x50c   :  { %v379_v53 = vpop.permute.xlu1 %378 }
 0x50d   :  { %v381_v54 = vadd.f32 %v379_v53, %v371_v52 }
 0x50f   :  { %1422 = vtanh.f32 %v381_v54 }
 0x519   :  { %v1423_v55 = vpop.eup %1422 }
 0x51a   :  { %384 = vrot.lane.b32.xlu0 %v1423_v55, %s1587_s22 }
 0x58c   :  { %v385_v56 = vpop.permute.xlu0 %384 }
 0x58d   :  { %v387_v57 = vmul.f32 %v1421_v47, %v385_v56  ;;  %v713_v56 = vld [vmem:[#allocation2 + $0xa] sm:$0x3] }
 0x58f   :  { %389 = vrot.lane.b32.xlu1 %v387_v57, %s1588_s3 }
 0x601   :  { %v390_v58 = vpop.permute.xlu1 %389 }
 0x602   :  { %392 = vst.msk [vmem:[#allocation3 + $0x1] sm:$0x1] %vm284_vm2, %v390_v58  ;;  %1268 = vmatmul.mubr.msk.f32.vlgmr.msra.gmra.mrb[2].mxu1 %vm92_vm1, %v390_v58 }
 0x603   :  { %393 = vst.msk [vmem:[#allocation3 + $0x8] sm:$0x2] %vm286_vm3, %v390_v58  ;;  %1370 = vmatpush3.bf16.msra.mxu1 %v1703_v12  ;;  %1289 = vmatprep.mubr.msk.f32.mxu1 %vm1585_vm0, %v1586_v1 }
 0x604   :  { %1371 = vmatprep.subr.bf16.mxu1 %v1584_v0 }
 0x607   :  { %1373 = vmatpush3.bf16.msra.mxu1 %v1706_v14 }
 0x608   :  { %1380 = vmatprep.subr.bf16.mxu1 %v1584_v0 }
 0x6d5   :  { %v464_v60 = vpop.f32.mrb[2].mxu1 }
 0x6d6   :  { %v468_v61 = vadd.f32 %v464_v60, %v395_v59  ;;  %v1269_v62 = vpop.f32.mrb[3].mxu1 }
 0x6d8   :  { %v1154_v63 = vmul.f32 -1.442695, %v468_v61 }
 0x6da   :  { %1424 = vpow2.f32 %v1154_v63 }
 0x6e4   :  { %v1425_v2 = vpop.eup %1424 }
 0x6e5   :  { %v472_v3 = vadd.f32 1.0, %v1425_v2 }
 0x6e7   :  { %1426 = vrcp.f32 %v472_v3 }
 0x6f1   :  { %v1427_v4 = vpop.eup %1426 }
 0x6f2   :  { %v475_v5 = vmul.f32 2.0, %v1427_v4  ;;  %v477_v9 = vmul.f32 %v1427_v4, %v381_v54 }
 0x6f4   :  { %v1155_v6 = vadd.f32 -1.0, %v475_v5 }
 0x6f6   :  { %479 = vrot.lane.b32.xlu0 %v1155_v6, %s1587_s22 }
 0x768   :  { %v480_v7 = vpop.permute.xlu0 %479 }
 0x769   :  { %v482_v8 = vmul.f32 %v1427_v4, %v480_v7 }
 0x76b   :  { %484 = vrot.lane.b32.xlu1 %v482_v8, %s1588_s3 }
 0x7dd   :  { %v485_v10 = vpop.permute.xlu1 %484 }
 0x7de   :  { %v487_v11 = vadd.f32 %v485_v10, %v477_v9  ;;  %v819_v9 = vld [vmem:[#allocation2 + $0xc] sm:$0x3] }
 0x7e0   :  { %1428 = vtanh.f32 %v487_v11 }
 0x7ea   :  { %v1429_v13 = vpop.eup %1428 }
 0x7eb   :  { %490 = vrot.lane.b32.xlu0 %v1429_v13, %s1587_s22 }
 0x85d   :  { %v491_v15 = vpop.permute.xlu0 %490 }
 0x85e   :  { %v493_v16 = vmul.f32 %v1427_v4, %v491_v15 }
 0x860   :  { %495 = vrot.lane.b32.xlu1 %v493_v16, %s1588_s3 }
 0x8d2   :  { %v496_v17 = vpop.permute.xlu1 %495 }
 0x8d3   :  { %498 = vst.msk [vmem:[#allocation3 + $0x2] sm:$0x1] %vm284_vm2, %v496_v17  ;;  %1279 = vmatmul.mubr.msk.f32.vlgmr.msra.gmra.mrb[4].mxu0 %vm92_vm1, %v496_v17 }
 0x8d4   :  { %499 = vst.msk [vmem:[#allocation3 + $0x9] sm:$0x2] %vm286_vm3, %v496_v17  ;;  %1376 = vmatpush3.bf16.msra.mxu0 %v1703_v12  ;;  %1300 = vmatprep.mubr.msk.f32.mxu0 %vm1585_vm0, %v1586_v1 }
 0x8d5   :  { %1377 = vmatprep.subr.bf16.mxu0 %v1584_v0 }
 0x8d8   :  { %1379 = vmatpush3.bf16.msra.mxu0 %v1706_v14 }
 0x8d9   :  { %1386 = vmatprep.subr.bf16.mxu0 %v1584_v0 }
 0x9a6   :  { %v570_v19 = vpop.f32.mrb[4].mxu0 }
 0x9a7   :  { %v574_v20 = vadd.f32 %v570_v19, %v501_v18  ;;  %v1280_v21 = vpop.f32.mrb[5].mxu0 }
 0x9a9   :  { %v1157_v22 = vmul.f32 -1.442695, %v574_v20 }
 0x9ab   :  { %1430 = vpow2.f32 %v1157_v22 }
 0x9b5   :  { %v1431_v23 = vpop.eup %1430 }
 0x9b6   :  { %v578_v24 = vadd.f32 1.0, %v1431_v23 }
 0x9b8   :  { %1432 = vrcp.f32 %v578_v24 }
 0x9c2   :  { %v1433_v25 = vpop.eup %1432 }
 0x9c3   :  { %v581_v26 = vmul.f32 2.0, %v1433_v25  ;;  %v583_v30 = vmul.f32 %v1433_v25, %v487_v11 }
 0x9c5   :  { %v1158_v27 = vadd.f32 -1.0, %v581_v26 }
 0x9c7   :  { %585 = vrot.lane.b32.xlu0 %v1158_v27, %s1587_s22 }
 0xa39   :  { %v586_v28 = vpop.permute.xlu0 %585 }
 0xa3a   :  { %v588_v29 = vmul.f32 %v1433_v25, %v586_v28 }
 0xa3c   :  { %590 = vrot.lane.b32.xlu1 %v588_v29, %s1588_s3 }
 0xaae   :  { %v591_v31 = vpop.permute.xlu1 %590 }
 0xaaf   :  { %v593_v32 = vadd.f32 %v591_v31, %v583_v30  ;;  %v925_v30 = vld [vmem:[#allocation2 + $0xe] sm:$0x3] }
 0xab1   :  { %1434 = vtanh.f32 %v593_v32 }
 0xabb   :  { %v1435_v33 = vpop.eup %1434 }
 0xabc   :  { %596 = vrot.lane.b32.xlu0 %v1435_v33, %s1587_s22 }
 0xb2e   :  { %v597_v34 = vpop.permute.xlu0 %596 }
 0xb2f   :  { %v599_v35 = vmul.f32 %v1433_v25, %v597_v34 }
 0xb31   :  { %601 = vrot.lane.b32.xlu1 %v599_v35, %s1588_s3 }
 0xba3   :  { %v602_v36 = vpop.permute.xlu1 %601 }
 0xba4   :  { %604 = vst.msk [vmem:[#allocation3 + $0x3] sm:$0x1] %vm284_vm2, %v602_v36  ;;  %1290 = vmatmul.mubr.msk.f32.vlgmr.msra.gmra.mrb[4].mxu1 %vm92_vm1, %v602_v36 }
 0xba5   :  { %605 = vst.msk [vmem:[#allocation3 + $0xa] sm:$0x2] %vm286_vm3, %v602_v36  ;;  %1382 = vmatpush3.bf16.msra.mxu1 %v1703_v12  ;;  %1311 = vmatprep.mubr.msk.f32.mxu1 %vm1585_vm0, %v1586_v1 }
 0xba6   :  { %1383 = vmatprep.subr.bf16.mxu1 %v1584_v0 }
 0xba9   :  { %1385 = vmatpush3.bf16.msra.mxu1 %v1706_v14 }
 0xc77   :  { %v676_v38 = vpop.f32.mrb[4].mxu1 }
 0xc78   :  { %v680_v39 = vadd.f32 %v676_v38, %v607_v37  ;;  %v1291_v40 = vpop.f32.mrb[5].mxu1 }
 0xc7a   :  { %v1160_v41 = vmul.f32 -1.442695, %v680_v39 }
 0xc7c   :  { %1436 = vpow2.f32 %v1160_v41 }
 0xc86   :  { %v1437_v42 = vpop.eup %1436 }
 0xc87   :  { %v684_v43 = vadd.f32 1.0, %v1437_v42 }
 0xc89   :  { %1438 = vrcp.f32 %v684_v43 }
 0xc93   :  { %v1439_v44 = vpop.eup %1438 }
 0xc94   :  { %v687_v45 = vmul.f32 2.0, %v1439_v44  ;;  %v689_v49 = vmul.f32 %v1439_v44, %v593_v32 }
 0xc96   :  { %v1161_v46 = vadd.f32 -1.0, %v687_v45 }
 0xc98   :  { %691 = vrot.lane.b32.xlu0 %v1161_v46, %s1587_s22  ;;  %v1032_v46 = vld [vmem:[#allocation10] sm:$0xff] }
 0xd0a   :  { %v692_v47 = vpop.permute.xlu0 %691 }
 0xd0b   :  { %v694_v48 = vmul.f32 %v1439_v44, %v692_v47  ;;  %v1033_v47 = vld [vmem:[#allocation10 + $0x8] sm:$0xff] }
 0xd0d   :  { %696 = vrot.lane.b32.xlu1 %v694_v48, %s1588_s3  ;;  %v1034_v48 = vld [vmem:[#allocation10 + $0x10] sm:$0xff] }
 0xd7f   :  { %v697_v50 = vpop.permute.xlu1 %696 }
 0xd80   :  { %v699_v51 = vadd.f32 %v697_v50, %v689_v49  ;;  %v1392_v49 = vpack.c.bf16 %v1033_v47, %v1032_v46  ;;  %v1035_v50 = vld [vmem:[#allocation10 + $0x18] sm:$0xff] }
 0xd82   :  { %1440 = vtanh.f32 %v699_v51  ;;  %1393 = vmatprep.subr.bf16.mxu1 %v1392_v49 }
 0xd8c   :  { %v1441_v52 = vpop.eup %1440 }
 0xd8d   :  { %702 = vrot.lane.b32.xlu0 %v1441_v52, %s1587_s22 }
 0xdff   :  { %v703_v53 = vpop.permute.xlu0 %702 }
 0xe00   :  { %v705_v54 = vmul.f32 %v1439_v44, %v703_v53 }
 0xe02   :  { %707 = vrot.lane.b32.xlu1 %v705_v54, %s1588_s3 }
 0xe74   :  { %v708_v55 = vpop.permute.xlu1 %707 }
 0xe75   :  { %710 = vst.msk [vmem:[#allocation3 + $0x4] sm:$0x1] %vm284_vm2, %v708_v55  ;;  %1301 = vmatmul.mubr.msk.f32.vlgmr.msra.gmra.mrb[6].mxu0 %vm92_vm1, %v708_v55 }
 0xe76   :  { %711 = vst.msk [vmem:[#allocation3 + $0xb] sm:$0x2] %vm286_vm3, %v708_v55  ;;  %1388 = vmatpush3.bf16.msra.mxu0 %v1703_v12  ;;  %1322 = vmatprep.mubr.msk.f32.mxu0 %vm1585_vm0, %v1586_v1 }
 0xe77   :  { %1389 = vmatprep.subr.bf16.mxu0 %v1584_v0 }
 0xe7a   :  { %1391 = vmatpush3.bf16.msra.mxu0 %v1706_v14 }
 0xf48   :  { %v782_v57 = vpop.f32.mrb[6].mxu0 }
 0xf49   :  { %v786_v58 = vadd.f32 %v782_v57, %v713_v56  ;;  %v1302_v59 = vpop.f32.mrb[7].mxu0  ;;  %v1171_v57 = vld [vmem:[%s1837_s5] ss:$0 sm:$0xff] }
 0xf4b   :  { %v1163_v60 = vmul.f32 -1.442695, %v786_v58 }
 0xf4d   :  { %1442 = vpow2.f32 %v1163_v60 }
 0xf57   :  { %v1443_v61 = vpop.eup %1442 }
 0xf58   :  { %v790_v62 = vadd.f32 1.0, %v1443_v61 }
 0xf5a   :  { %1444 = vrcp.f32 %v790_v62 }
 0xf64   :  { %v1445_v63 = vpop.eup %1444 }
 0xf65   :  { %v793_v2 = vmul.f32 2.0, %v1445_v63  ;;  %v795_v0 = vmul.f32 %v1445_v63, %v699_v51  ;;  %v1396_v51 = vpack.c.bf16 %v1035_v50, %v1034_v48 }
 0xf67   :  { %v1164_v3 = vadd.f32 -1.0, %v793_v2 }
 0xf69   :  { %797 = vrot.lane.b32.xlu0 %v1164_v3, %s1587_s22 }
 0xfdb   :  { %v798_v12 = vpop.permute.xlu0 %797 }
 0xfdc   :  { %v800_v1 = vmul.f32 %v1445_v63, %v798_v12 }
 0xfde   :  { %802 = vrot.lane.b32.xlu1 %v800_v1, %s1588_s3 }
0x1050   :  { %v803_v14 = vpop.permute.xlu1 %802 }
0x1051   :  { %v805_v4 = vadd.f32 %v803_v14, %v795_v0 }
0x1053   :  { %1446 = vtanh.f32 %v805_v4 }
0x105d   :  { %v1447_v5 = vpop.eup %1446 }
0x105e   :  { %808 = vrot.lane.b32.xlu0 %v1447_v5, %s1587_s22 }
0x10d0   :  { %v809_v6 = vpop.permute.xlu0 %808 }
0x10d1   :  { %v811_v7 = vmul.f32 %v1445_v63, %v809_v6 }
0x10d3   :  { %813 = vrot.lane.b32.xlu1 %v811_v7, %s1588_s3 }
0x1145   :  { %v814_v8 = vpop.permute.xlu1 %813 }
0x1146   :  { %816 = vst.msk [vmem:[#allocation3 + $0x5] sm:$0x1] %vm284_vm2, %v814_v8  ;;  %1312 = vmatmul.mubr.msk.f32.vlgmr.msra.gmra.mrb[6].mxu1 %vm92_vm1, %v814_v8 }
0x1147   :  { %817 = vst.msk [vmem:[#allocation3 + $0xc] sm:$0x2] %vm286_vm3, %v814_v8  ;;  %1395 = vmatpush3.bf16.msra.mxu1 %v1392_v49 }
0x1148   :  { %1397 = vmatprep.subr.bf16.mxu1 %v1396_v51 }
0x114b   :  { %1399 = vmatpush3.bf16.msra.mxu1 %v1396_v51 }
0x1219   :  { %v888_v10 = vpop.f32.mrb[6].mxu1 }
0x121a   :  { %v892_v11 = vadd.f32 %v888_v10, %v819_v9  ;;  %v1313_v13 = vpop.f32.mrb[7].mxu1 }
0x121c   :  { %v1166_v15 = vmul.f32 -1.442695, %v892_v11 }
0x121e   :  { %1448 = vpow2.f32 %v1166_v15 }
0x1228   :  { %v1449_v16 = vpop.eup %1448 }
0x1229   :  { %v896_v17 = vadd.f32 1.0, %v1449_v16 }
0x122b   :  { %1450 = vrcp.f32 %v896_v17 }
0x1235   :  { %v1451_v18 = vpop.eup %1450 }
0x1236   :  { %v899_v19 = vmul.f32 2.0, %v1451_v18  ;;  %v901_v23 = vmul.f32 %v1451_v18, %v805_v4 }
0x1238   :  { %v1167_v20 = vadd.f32 -1.0, %v899_v19 }
0x123a   :  { %903 = vrot.lane.b32.xlu0 %v1167_v20, %s1587_s22 }
0x12ac   :  { %v904_v21 = vpop.permute.xlu0 %903 }
0x12ad   :  { %v906_v22 = vmul.f32 %v1451_v18, %v904_v21 }
0x12af   :  { %908 = vrot.lane.b32.xlu1 %v906_v22, %s1588_s3 }
0x1321   :  { %v909_v24 = vpop.permute.xlu1 %908 }
0x1322   :  { %v911_v25 = vadd.f32 %v909_v24, %v901_v23 }
0x1324   :  { %1452 = vtanh.f32 %v911_v25 }
0x132e   :  { %v1453_v26 = vpop.eup %1452 }
0x132f   :  { %914 = vrot.lane.b32.xlu0 %v1453_v26, %s1587_s22 }
0x13a1   :  { %v915_v27 = vpop.permute.xlu0 %914 }
0x13a2   :  { %v917_v28 = vmul.f32 %v1451_v18, %v915_v27 }
0x13a4   :  { %919 = vrot.lane.b32.xlu1 %v917_v28, %s1588_s3 }
0x1416   :  { %v920_v29 = vpop.permute.xlu1 %919 }
0x1417   :  { %922 = vst.msk [vmem:[#allocation3 + $0x6] sm:$0x1] %vm284_vm2, %v920_v29  ;;  %1323 = vmatmul.mubr.msk.f32.vlgmr.msra.gmra.mrb[8].mxu0 %vm92_vm1, %v920_v29 }
0x1418   :  { %923 = vst.msk [vmem:[#allocation3 + $0xd] sm:$0x2] %vm286_vm3, %v920_v29 }
0x14ea   :  { %v994_v31 = vpop.f32.mrb[8].mxu0 }
0x14eb   :  { %v998_v32 = vadd.f32 %v994_v31, %v925_v30  ;;  %v1324_v33 = vpop.f32.mrb[9].mxu0 }
0x14ed   :  { %v1169_v34 = vmul.f32 -1.442695, %v998_v32 }
0x14ef   :  { %1454 = vpow2.f32 %v1169_v34 }
0x14f9   :  { %v1455_v35 = vpop.eup %1454 }
0x14fa   :  { %v1002_v36 = vadd.f32 1.0, %v1455_v35 }
0x14fc   :  { %1456 = vrcp.f32 %v1002_v36 }
0x1506   :  { %v1457_v37 = vpop.eup %1456 }
0x1507   :  { %v1005_v38 = vmul.f32 2.0, %v1457_v37  ;;  %v1007_v42 = vmul.f32 %v1457_v37, %v911_v25 }
0x1509   :  { %v1170_v39 = vadd.f32 -1.0, %v1005_v38 }
0x150b   :  { %1009 = vrot.lane.b32.xlu0 %v1170_v39, %s1587_s22 }
0x157d   :  { %v1010_v40 = vpop.permute.xlu0 %1009 }
0x157e   :  { %v1012_v41 = vmul.f32 %v1457_v37, %v1010_v40 }
0x1580   :  { %1014 = vrot.lane.b32.xlu1 %v1012_v41, %s1588_s3 }
0x15f2   :  { %v1015_v43 = vpop.permute.xlu1 %1014 }
0x15f3   :  { %v1017_v44 = vadd.f32 %v1015_v43, %v1007_v42 }
0x15f5   :  { %1458 = vtanh.f32 %v1017_v44 }
0x15ff   :  { %v1459_v45 = vpop.eup %1458 }
0x1600   :  { %1020 = vrot.lane.b32.xlu0 %v1459_v45, %s1587_s22 }
0x1672   :  { %v1021_v52 = vpop.permute.xlu0 %1020 }
0x1673   :  { %v1023_v53 = vmul.f32 %v1457_v37, %v1021_v52 }
0x1675   :  { %1025 = vrot.lane.b32.xlu1 %v1023_v53, %s1588_s3 }
0x16e7   :  { %v1026_v54 = vpop.permute.xlu1 %1025 }
0x16e8   :  { %1028 = vst.msk [vmem:[#allocation3 + $0x7] sm:$0x1] %vm284_vm2, %v1026_v54 }
0x16e9   :  { %1029 = vst.msk [vmem:[#allocation3 + $0xe] sm:$0x2] %vm286_vm3, %v1026_v54 }
0x16ef   :  { %v1030_v55 = vld [vmem:[#allocation3] sm:$0xff] }
0x16f0   :  { %v1031_v56 = vld [vmem:[#allocation3 + $0x8] sm:$0xff]  ;;  %1333 = vmatprep.mubr.msk.f32.mxu1 %vm92_vm1, %v1030_v55 }
0x16f1   :  { %1334 = vmatmul.mubr.msk.f32.vlgmr.msra.gmra.mrb[8].mxu1 %vm92_vm1, %v1031_v56 }
0x17c4   :  { %v1335_v58 = vpop.f32.mrb[8].mxu1 }
0x17c5   :  { %v1121_v59 = vadd.f32 %v1335_v58, %v1171_v57  ;;  %v1115_v60 = vpop.f32.mrb[9].mxu1 }
0x17c6   :  { %v1116_v61 = vadd.f32 %v1171_v57, %v1115_v60 }
0x17c7   :  { %1125 = vst [vmem:[#allocation12 + $0x8] sm:$0xff] %v1121_v59 }
0x17c8   :  { %1124 = vst [vmem:[#allocation12] sm:$0xff] %v1116_v61 }
0x17c9   :  { %1559 = shalt.err (!%p1556_p8)
}
0x17ca   :  { %s1560_s5 = scalar_lea.hbm %s1838_s6, 256 }
0x17cb   :  { %p1561_p9 = scmp.ne.s32.totalorder %s1838_s6, %s1560_s5  ;;  %p1564_p10 = scmp.lt.u32.totalorder %s1560_s5, %s1838_s6 }
0x17cd   :  { %p1566_p11 = pnand %p1564_p10, %p1561_p9 }
0x17cf   :  { %1569 = shalt.err (!%p1566_p11)
}
0x17d0   :  { %1137 = dma.vmem_to_hbm [thread:$0]  %s1132_s27, 256, %s1838_s6, [#allocation6], %s1580_s9, %s1580_s9, %s1581_s10  }
0x17d1   :  { %1576 = dma.done.wait [#allocation6], 256  }
0x17d2   :  { %1577 = vsyncadd [#allocation6], 4294967040 }
0x17d3   :  { %1141 = vsyncpa [#allocation5], 1 }
0x17d4   :  { %1142 = vsyncpa [#allocation8], 1 }
0x17d5   :  { %1143 = vsyncpa [#allocation11], 1 }
0x17d6   :  { %1144 = vsyncpa [#allocation6], 1 }

</bundles_post_ra>
